<compile_context>
chip_gen: v6e
topology: v6e:2x2x1
jax: 0.10.0
libtpu: 0.0.40
codegen_flags: <defaults>
</compile_context>

<pallas_src>
import functools

import numpy as np
import jax
import jax.numpy as jnp
from jax.experimental import pallas as pl
from jax.experimental.pallas import tpu as pltpu


# ------------------------------ Pallas kernel -------------------------------

def _rope_kernel(x_ref, pos_ref, invf_ref, sa_ref, sb_ref, o_ref, *, lane_roll):
    """Blocks: x/out (TR, F); pos (TR, 1); invf/sa/sb (1, F).  F = H * D.

    out = x * cos(pos*invf) + x[f+1] * sin(pos*invf) * sa
                            + x[f-1] * sin(pos*invf) * sb
    sa = -1 on within-head even lanes (0 elsewhere), sb = +1 on within-head odd
    lanes (0 elsewhere); invf = 0 on the odd passthrough tail -> cos=1, sin=0.
    """
    x = x_ref[...].astype(jnp.float32)                     # (TR, F)
    f = x.shape[-1]
    freqs = pos_ref[...] * invf_ref[...]                   # (TR,1)*(1,F) -> (TR,F)
    c = jnp.cos(freqs)
    s = jnp.sin(freqs)
    if lane_roll:
        x_nxt = pltpu.roll(x, f - 1, 1)                    # x[..., f+1] (wrap unused)
        x_prv = pltpu.roll(x, 1, 1)                        # x[..., f-1] (wrap unused)
    else:
        x_nxt = jnp.concatenate([x[:, 1:], x[:, :1]], axis=1)
        x_prv = jnp.concatenate([x[:, f - 1:], x[:, :f - 1]], axis=1)
    out = x * c + x_nxt * (s * sa_ref[...]) + x_prv * (s * sb_ref[...])
    o_ref[...] = out.astype(o_ref.dtype)


# --------------------------------- wrapper -----------------------------------

def rope_pallas(x, input_pos, *, base=10000, dim=None):
    """Rotary positional embedding, matching the PyTorch module's forward.

    x:         (B, S, H, D) float array
    input_pos: (B, S) integer positions  (exact in f32 for |pos| < 2**24)
    dim:       the module's constructor `dim` (defaults to head_dim D)
    """
    B, S, H, D = x.shape
    dim = D if dim is None else dim
    De = D - (D % 2)                        # head_dim_even
    if De < 2:                              # degenerate branch of the module
        return x
    half = De // 2

    # inv_freq exactly as in the module, sliced to head_dim_even // 2.
    inv_freq = 1.0 / (base ** (np.arange(0, dim, 2, dtype=np.float32) / np.float32(dim)))
    assert inv_freq.shape[0] >= half, (
        "RoPE `dim` too small for head_dim: need ceil(dim/2) >= head_dim_even//2")
    inv_freq = inv_freq[:half].astype(np.float32)

    rows = B * S
    F = H * D

    # ---- constant (1, F) lane tables (built on host, trivial HBM footprint) ----
    invf_head = np.zeros((D,), np.float32)
    invf_head[:De] = np.repeat(inv_freq, 2)          # f0,f0,f1,f1,...  (0 on tail)
    sa_head = np.zeros((D,), np.float32)
    sa_head[0:De:2] = -1.0                           # even lanes pick -sin * x[f+1]
    sb_head = np.zeros((D,), np.float32)
    sb_head[1:De:2] = 1.0                            # odd lanes pick  +sin * x[f-1]

    invf_lane = jnp.asarray(np.tile(invf_head, H)[None, :])   # (1, F)
    sa_lane = jnp.asarray(np.tile(sa_head, H)[None, :])       # (1, F)
    sb_lane = jnp.asarray(np.tile(sb_head, H)[None, :])       # (1, F)

    x2d = x.reshape(rows, F)
    pos2d = input_pos.reshape(rows, 1).astype(jnp.float32)    # (rows, 1)

    # ---- row tiling: lane-dense full-F blocks, ~2 MiB of x per block ----
    itemsize = max(jnp.dtype(x.dtype).itemsize, 4)   # f32 working set in-kernel
    target_bytes = 2 << 20
    tile_r = max(1, target_bytes // (F * itemsize))
    if rows <= 8:
        tile_r = rows                                # single full block (always legal)
    else:
        # Keep >=2 (ideally >=8) grid steps so the parallel axis can shard
        # across v7x's two TensorCores and the DMA pipeline has work to overlap.
        desired_tiles = 8 if rows >= 64 else 2
        cap = ((-(-rows // desired_tiles) + 7) // 8) * 8
        tile_r = min(tile_r, cap, 1024)
        tile_r = max(8, (tile_r // 8) * 8)

    grid = (pl.cdiv(rows, tile_r),)                  # partial last block is masked

    row_spec = pl.BlockSpec((tile_r, F), lambda r: (r, 0))
    pos_spec = pl.BlockSpec((tile_r, 1), lambda r: (r, 0))
    vec_spec = pl.BlockSpec((1, F), lambda r: (0, 0))

    kernel = functools.partial(_rope_kernel, lane_roll=(F % 128 == 0))

    out2d = pl.pallas_call(
        kernel,
        grid=grid,
        in_specs=[row_spec, pos_spec, vec_spec, vec_spec, vec_spec],
        out_specs=row_spec,
        out_shape=jax.ShapeDtypeStruct((rows, F), x.dtype),
        compiler_params=pltpu.CompilerParams(
            dimension_semantics=("parallel",),
            vmem_limit_bytes=48 * 1024 * 1024,       # <= v7x physical; plenty on v5e/v6e
        ),
    )(x2d, pos2d, invf_lane, sa_lane, sb_lane)

    return out2d.reshape(B, S, H, D)


# --------------------------- pure-JAX reference ------------------------------

def rope_reference(x, input_pos, *, base=10000, dim=None):
    """Line-by-line port of the PyTorch module's forward."""
    B, S, H, D = x.shape
    dim = D if dim is None else dim
    inv_freq = 1.0 / (base ** (jnp.arange(0, dim, 2, dtype=jnp.float32) / dim))
    if D % 2 != 0:
        x_even, x_odd, De = x[..., :-1], x[..., -1:], D - 1
    else:
        x_even, x_odd, De = x, None, D
    if De < 2:
        return x
    x_pairs = x_even.reshape(B, S, H, De // 2, 2)
    pos = input_pos.astype(jnp.float32).reshape(-1)
    freqs = (pos[:, None] * inv_freq[: De // 2][None, :]).reshape(B, S, -1)
    cosp = jnp.cos(freqs)[:, :, None, :]
    sinp = jnp.sin(freqs)[:, :, None, :]
    x1, x2 = x_pairs[..., 0], x_pairs[..., 1]
    r1 = x1 * cosp - x2 * sinp
    r2 = x1 * sinp + x2 * cosp
    rot = jnp.stack([r1, r2], axis=-1).reshape(B, S, H, De)
    if x_odd is not None:
        return jnp.concatenate([rot, x_odd], axis=-1)
    return rot


# ----------------------------------- main ------------------------------------

if __name__ == "__main__":
    key = jax.random.PRNGKey(0)
    kx, kp, kx2, kp2, kx3, kp3 = jax.random.split(key, 6)

    # Case 1: even head_dim, F = H*D = 32 (unaligned-lane fallback path).
    B, S, H, D = 2, 16, 4, 8
    x = jax.random.normal(kx, (B, S, H, D), jnp.float32)
    pos = jax.random.randint(kp, (B, S), 0, 2048, dtype=jnp.int32)
    out = jax.block_until_ready(rope_pallas(x, pos))
    ref = rope_reference(x, pos)
    assert out.shape == x.shape
    assert jnp.allclose(out, ref, atol=2e-3, rtol=2e-3), "RoPE (even head_dim) mismatch"

    # Case 2: odd head_dim — last channel must pass through (to f32 rounding).
    B2, S2, H2, D2 = 2, 8, 2, 7
    x2 = jax.random.normal(kx2, (B2, S2, H2, D2), jnp.float32)
    pos2 = jax.random.randint(kp2, (B2, S2), 0, 512, dtype=jnp.int32)
    out2 = jax.block_until_ready(rope_pallas(x2, pos2))
    ref2 = rope_reference(x2, pos2)
    assert jnp.allclose(out2, ref2, atol=2e-3, rtol=2e-3), "RoPE (odd head_dim) mismatch"
    assert jnp.allclose(out2[..., -1], x2[..., -1], atol=1e-6, rtol=0), "odd tail not passthrough"

    # Case 3: lane-aligned F = H*D = 128 — exercises the pltpu.roll fast path.
    B3, S3, H3, D3 = 2, 8, 4, 32
    x3 = jax.random.normal(kx3, (B3, S3, H3, D3), jnp.float32)
    pos3 = jax.random.randint(kp3, (B3, S3), 0, 2048, dtype=jnp.int32)
    out3 = jax.block_until_ready(rope_pallas(x3, pos3))
    ref3 = rope_reference(x3, pos3)
    assert jnp.allclose(out3, ref3, atol=2e-3, rtol=2e-3), "RoPE (lane-aligned) mismatch"

    print("KERNEL_OK")
</pallas_src>

<mosaic_0001>
module attributes {stable_mosaic.version = 11 : i64} {
  func.func @_rope_kernel(%arg0: i32, %arg1: memref<16x32xf32, #tpu.memory_space<vmem>>, %arg2: memref<16x1xf32, #tpu.memory_space<vmem>>, %arg3: memref<1x32xf32, #tpu.memory_space<vmem>>, %arg4: memref<1x32xf32, #tpu.memory_space<vmem>>, %arg5: memref<1x32xf32, #tpu.memory_space<vmem>>, %arg6: memref<16x32xf32, #tpu.memory_space<vmem>>) attributes {dimension_semantics = [#tpu.dimension_semantics<parallel>], iteration_bounds = array<i64: 2>, scalar_prefetch = 0 : i64, scratch_operands = 0 : i64, tpu.core_type = #tpu.core_type<tc>, window_params = [{transform_indices = @transform_0, window_bounds = array<i64: 16, 32>}, {transform_indices = @transform_1, window_bounds = array<i64: 16, 1>}, {pipeline_mode = #tpu.pipeline_mode<synchronous>, transform_indices = @transform_2, window_bounds = array<i64: 1, 32>}, {pipeline_mode = #tpu.pipeline_mode<synchronous>, transform_indices = @transform_3, window_bounds = array<i64: 1, 32>}, {pipeline_mode = #tpu.pipeline_mode<synchronous>, transform_indices = @transform_4, window_bounds = array<i64: 1, 32>}, {transform_indices = @transform_5, window_bounds = array<i64: 16, 32>}]} {
    %c0 = arith.constant 0 : index
    %c0_0 = arith.constant 0 : index
    %0 = vector.load %arg1[%c0, %c0_0] : memref<16x32xf32, #tpu.memory_space<vmem>>, vector<16x32xf32>
    %c0_1 = arith.constant 0 : index
    %c0_2 = arith.constant 0 : index
    %1 = vector.load %arg2[%c0_1, %c0_2] : memref<16x1xf32, #tpu.memory_space<vmem>>, vector<16x1xf32>
    %c0_3 = arith.constant 0 : index
    %c0_4 = arith.constant 0 : index
    %2 = vector.load %arg3[%c0_3, %c0_4] : memref<1x32xf32, #tpu.memory_space<vmem>>, vector<1x32xf32>
    %3 = vector.broadcast %1 : vector<16x1xf32> to vector<16x32xf32>
    %4 = vector.broadcast %2 : vector<1x32xf32> to vector<16x32xf32>
    %5 = arith.mulf %3, %4 : vector<16x32xf32>
    %6 = math.cos %5 : vector<16x32xf32>
    %7 = math.sin %5 : vector<16x32xf32>
    %8 = vector.extract_strided_slice %0 {offsets = [0, 1], sizes = [16, 31], strides = [1, 1]} : vector<16x32xf32> to vector<16x31xf32>
    %9 = vector.extract_strided_slice %0 {offsets = [0, 0], sizes = [16, 1], strides = [1, 1]} : vector<16x32xf32> to vector<16x1xf32>
    %10 = tpu.concatenate %8, %9 in 1 : vector<16x31xf32>, vector<16x1xf32> -> vector<16x32xf32>
    %11 = vector.extract_strided_slice %0 {offsets = [0, 31], sizes = [16, 1], strides = [1, 1]} : vector<16x32xf32> to vector<16x1xf32>
    %12 = vector.extract_strided_slice %0 {offsets = [0, 0], sizes = [16, 31], strides = [1, 1]} : vector<16x32xf32> to vector<16x31xf32>
    %13 = tpu.concatenate %11, %12 in 1 : vector<16x1xf32>, vector<16x31xf32> -> vector<16x32xf32>
    %14 = arith.mulf %0, %6 : vector<16x32xf32>
    %c0_5 = arith.constant 0 : index
    %c0_6 = arith.constant 0 : index
    %15 = vector.load %arg4[%c0_5, %c0_6] : memref<1x32xf32, #tpu.memory_space<vmem>>, vector<1x32xf32>
    %16 = vector.broadcast %15 : vector<1x32xf32> to vector<16x32xf32>
    %17 = arith.mulf %7, %16 : vector<16x32xf32>
    %18 = arith.mulf %10, %17 : vector<16x32xf32>
    %19 = arith.addf %14, %18 : vector<16x32xf32>
    %c0_7 = arith.constant 0 : index
    %c0_8 = arith.constant 0 : index
    %20 = vector.load %arg5[%c0_7, %c0_8] : memref<1x32xf32, #tpu.memory_space<vmem>>, vector<1x32xf32>
    %21 = vector.broadcast %20 : vector<1x32xf32> to vector<16x32xf32>
    %22 = arith.mulf %7, %21 : vector<16x32xf32>
    %23 = arith.mulf %13, %22 : vector<16x32xf32>
    %24 = arith.addf %19, %23 : vector<16x32xf32>
    %c0_9 = arith.constant 0 : index
    %c0_10 = arith.constant 0 : index
    %25 = vector.load %arg6[%c0_9, %c0_10] : memref<16x32xf32, #tpu.memory_space<vmem>>, vector<16x32xf32>
    tpu.vector_store %arg6[%c0_9, %c0_10], %24 {strides = array<i32>} : memref<16x32xf32, #tpu.memory_space<vmem>>, vector<16x32xf32>,
    return
  }
  func.func @transform_0(%arg0: i32) -> (i32, i32) {
    %c0_i32 = arith.constant 0 : i32
    %c0_i32_0 = arith.constant 0 : i32
    return %arg0, %c0_i32 : i32, i32
  }
  func.func @transform_1(%arg0: i32) -> (i32, i32) {
    %c0_i32 = arith.constant 0 : i32
    %c0_i32_0 = arith.constant 0 : i32
    return %arg0, %c0_i32 : i32, i32
  }
  func.func @transform_2(%arg0: i32) -> (i32, i32) {
    %c0_i32 = arith.constant 0 : i32
    %c0_i32_0 = arith.constant 0 : i32
    %c0_i32_1 = arith.constant 0 : i32
    return %c0_i32, %c0_i32_0 : i32, i32
  }
  func.func @transform_3(%arg0: i32) -> (i32, i32) {
    %c0_i32 = arith.constant 0 : i32
    %c0_i32_0 = arith.constant 0 : i32
    %c0_i32_1 = arith.constant 0 : i32
    return %c0_i32, %c0_i32_0 : i32, i32
  }
  func.func @transform_4(%arg0: i32) -> (i32, i32) {
    %c0_i32 = arith.constant 0 : i32
    %c0_i32_0 = arith.constant 0 : i32
    %c0_i32_1 = arith.constant 0 : i32
    return %c0_i32, %c0_i32_0 : i32, i32
  }
  func.func @transform_5(%arg0: i32) -> (i32, i32) {
    %c0_i32 = arith.constant 0 : i32
    %c0_i32_0 = arith.constant 0 : i32
    return %arg0, %c0_i32 : i32, i32
  }
}

</mosaic_0001>

<bundles_post_ra>
// kernel: tpu_custom_call.1
= control target key start
LH: loop header
LB: loop body
LE: loop exit
PB: predicated region body
PF: predicated region fallthrough
CT: control target
= control target key end

     0   :  { %10 = vsyncpa [#allocation3], 0  ;;  %s1253_s0 = inlined_call_operand.vmem [shape: f32[32,32], index: 0, kind: input, shape index: {}]   ;;  %s1254_s1 = inlined_call_operand.vmem [shape: f32[32,1], index: 1, kind: input, shape index: {}]   ;;  %s1255_s2 = inlined_call_operand.vmem [shape: f32[1,32], index: 2, kind: input, shape index: {}]   ;;  %s1256_s3 = inlined_call_operand.vmem [shape: f32[1,32], index: 3, kind: input, shape index: {}]   ;;  %s1257_s4 = inlined_call_operand.vmem [shape: f32[1,32], index: 4, kind: input, shape index: {}]   ;;  %s1258_s5 = inlined_call_operand.hbm [shape: f32[32,32], index: 5, kind: output, shape index: {}]  }
   0x1   :  { %12 = vsyncpa [#allocation3 + $0x1], 0  ;;  %s1045_s18 = smov 0   ;;  %s1047_s19 = smov 0  }
   0x2   :  { %s1049_s20 = smov 0   ;;  %s1051_s21 = smov 0  }
   0x3 LB: > { %s1066_s22 = sadd.s32 4294967295, %s999_s21   ;;  %s836_s23 = sadd.s32 4294967294, %s999_s21   ;;  %s999_s21 = sphi %s1051_s21, %s1266_s21   ;;  %s995_s20 = sphi %s1049_s20, %s1265_s20   ;;  %s991_s19 = sphi %s1047_s19, %s1264_s19   ;;  %s987_s18 = sphi %s1045_s18, %s1263_s18  }
   0x4   : > { %s1070_s24 = sadd.s32 1, %s999_s21   ;;  %s140_s25 = sadd.s32 1, %s995_s20 }
   0x5   : > { %s137_s26 = ssub.s32 %s999_s21, %s1070_s24  ;;  %p150_p0 = scmp.ne.s32.totalorder %s995_s20, %s991_s19 }
   0x6   : > { %p138_p1 = scmp.eq.s32.totalorder %s137_s26, 0  ;;  %p151_p2 = scmp.eq.s32.totalorder %s1066_s22, 1 }
   0x7   : > { %p156_p3 = scmp.ne.s32.totalorder %s991_s19, %s987_s18  ;;  %p157_p4 = scmp.eq.s32.totalorder %s836_s23, 1 }
   0x8   : > { %s1081_s27 = scalar_select %p138_p1, %s995_s20, %s140_s25  }
   0x9   : > { %p1083_p5 = por %p151_p2, %p150_p0  ;;  %p1087_p6 = por %p157_p4, %p156_p3 }
   0xa   : > { %p839_p7 = scmp.ge.s32.totalorder %s999_s21, 1  ;;  %p202_p8 = scmp.lt.s32.totalorder %s999_s21, 3 }
   0xc   : > { %p203_p9 = pnand %p839_p7, %p202_p8 }
   0xd   : > { %s841_s30 = sshll.u32 (!%p203_p9), %s1066_s22, 1  ;;  %s1002_s13 = smov (!%p203_p9), 127  }
   0xe   : > { %206 = sbr.rel (%p203_p9) target bundleno = 264 (0x108), region = 40  ;;  %p236_p10 = scmp.lt.s32.totalorder (!%p203_p9), %s841_s30, 3 }
   0xf   : > { %s1003_s14 = smov (!%p203_p9), 31   ;;  %s1004_s15 = smov (!%p203_p9), 97  }
  0x10   : > { %s1005_s16 = smov (!%p203_p9), 1   ;;  %s232_s7 = sand.u32 (!%p203_p9), 1, %s991_s19  }
  0x11   : > { %s840_s8 = sshll.u32 (!%p203_p9), %s232_s7, 4  ;;  %s869_s10 = sshll.u32 (!%p203_p9), %s1066_s22, 8 }
  0x12   : > { %s1213_s22 = scalar_lea.sflag (!%p203_p9), [#allocation3], %s232_s7 }
  0x13   : > { %v1001_v0 = vmov 0   ;;  %s1268_s30 = smov (!%p236_p10, %s841_s30), 3  ;;  %v845_v5 = vld [vmem:[%s1255_s2] ss:$0 sm:$0xff]  ;;  %v1006_v26 = vmov 683565275  }
  0x14   : > { %930 = vset.pattern.permute.xlu0 %v1001_v0  ;;  %s842_s6 = sshll.u32 %s1268_s30, 3  ;;  %v1007_v30 = vmov 2475754826   ;;  %v1008_v32 = vmov 2131351028  }
  0x15   : > { %s245_s9 = scalar_lea.vmem %s1254_s1, %s842_s6  ;;  %s239_s12 = scalar_lea.vmem %s1253_s0, %s842_s6  ;;  %v1009_v34 = vmov 2102212464   ;;  %v1010_v36 = vmov 920167782   ;;  %v1011_v43 = vmov 1326507024  }
  0x16   : > { %v250_v1 = vld [vmem:[%s245_s9] sm:$0xff]  ;;  %v1103_v3 = vld [vmem:[%s239_s12 + $0x8] sm:$0xff] }
  0x17   : > { %v1100_v2 = vld [vmem:[%s239_s12] sm:$0xff]  ;;  %255 = vperm.xlu0 %930, %v250_v1   ;;  %v251_v4 = vld [vmem:[%s245_s9 + $0x8] sm:$0xff]  ;;  %s234_s9 = scalar_lea.vmem [#allocation2], %s840_s8 }
  0x18   : > { %687 = vrot.lane.b32.xlu1 %v1100_v2, %s1002_s13  ;;  %s762_s11 = sshll.u32 %s234_s9, 4  ;;  %s1208_s11 = int_to_ptr.vmem [resolvable:$true] %s762_s11 }
  0x1b   : > { %260 = vperm.xlu0 %930, %v251_v4  }
  0x1c   : > { %689 = vrot.lane.b32.xlu1 %v1103_v3, %s1002_s13 }
  0x1f   : > { %693 = vrot.lane.b32.xlu0 %v1100_v2, %s1003_s14 }
  0x20   : > { %695 = vrot.lane.b32.xlu1 %v1103_v3, %s1003_s14  ;;  %s1206_s14 = scalar_lea.hbm %s1258_s5, %s869_s10 }
  0x23   : > { %702 = vrot.lane.b32.xlu0 %v1100_v2, %s1004_s15 }
  0x24   : > { %704 = vrot.lane.b32.xlu1 %v1103_v3, %s1004_s15  ;;  %s939_s15 = scalar_lea.vmem %s1208_s11, 256 }
  0x25   : > { %p940_p11 = scmp.ne.s32.totalorder %s1208_s11, %s939_s15 }
  0x27   : > { %708 = vrot.lane.b32.xlu0 %v1100_v2, %s1005_s16  ;;  %p941_p12 = pnand %p940_p11, %p1083_p5 }
  0x28   : > { %710 = vrot.lane.b32.xlu1 %v1103_v3, %s1005_s16  ;;  %s1012_s16 = smov [#allocation2]  }
  0x29   : > { %p942_p13 = pneg %p941_p12  ;;  %s943_s17 = sshll.u32 %s1012_s16, 4  ;;  %s944_s17 = int_to_ptr.vmem [resolvable:$false] %s943_s17 }
  0x2a   : > { %s945_s23 = scalar_lea.vmem %s944_s17, 512  ;;  %p946_p0 = scmp.lt.s32.totalorder %s1208_s11, %s944_s17 }
  0x2b   : > { %p947_p1 = scmp.lt.s32.totalorder %s945_s23, %s939_s15 }
  0x2d   : > { %p948_p2 = por %p947_p1, %p946_p0 }
  0x2f   : > { %p949_p3 = pnand %p948_p2, %p942_p13 }
  0x92   : > { %v256_v6 = vpop.permute.xlu0 %255 }
  0x93   : > { %v1115_v7 = vmul.f32 %v845_v5, %v256_v6 }
  0x95   : > { %v271_v8 = vand.u32 2147483647, %v1115_v7  ;;  %v274_v9 = vand.u32 2139095040, %v1115_v7  ;;  %vm273_vm14 = vcmp.lt.s32.totalorder %v1115_v7, 0 }
  0x96   : > { %v261_v10 = vpop.permute.xlu0 %260 }
  0x97   : > { %v275_v11 = vshrl.u32 %v274_v9, 23  ;;  %v1119_v12 = vmul.f32 %v845_v5, %v261_v10  ;;  %v278_v13 = vand.u32 8388607, %v271_v8  ;;  %vm272_vm15 = vcmp.le.f32.partialorder %v271_v8, 0.7853982 }
  0x99   : > { %v846_v14 = vadd.s32 4294967169, %v275_v11  ;;  %v377_v15 = vand.u32 2139095040, %v1119_v12  ;;  %v279_v17 = vor.u32 8388608, %v278_v13  ;;  %v374_v19 = vand.u32 2147483647, %v1119_v12 }
  0x9a   : > { %v694_v8 = vpop.permute.xlu0 %693 }
  0x9b   : > { %v281_v16 = vadd.s32 1, %v846_v14  ;;  %v378_v18 = vshrl.u32 %v377_v15, 23  ;;  %v1125_v24 = vshll.u32 %v279_v17, 8  ;;  %v381_v28 = vand.u32 8388607, %v374_v19 }
  0x9d   : > { %vm282_vm0 = vcmp.gt.s32.totalorder %v281_v16, 0  ;;  %v850_v21 = vadd.s32 4294967169, %v378_v18  ;;  %v382_v58 = vor.u32 8388608, %v381_v28 }
  0x9e   : > { %v283_v20 = vsel %vm282_vm0, %v281_v16, 0  ;;  %vm376_vm0 = vcmp.lt.s32.totalorder %v1119_v12, 0 }
  0x9f   : > { %v284_v22 = vshrl.u32 %v283_v20, 5  ;;  %v285_v23 = vand.u32 31, %v283_v20  ;;  %v384_v29 = vadd.s32 1, %v850_v21  ;;  %v422_v11 = vshll.u32 %v382_v58, 8 }
  0xa1   : > { %v286_v25 = vsub.s32 32, %v285_v23  ;;  %v288_v27 = vshll.u32 %v1006_v26, %v285_v23  ;;  %v291_v31 = vshll.u32 %v1007_v30, %v285_v23  ;;  %v294_v33 = vshll.u32 %v1008_v32, %v285_v23 }
  0xa2   : > { %v297_v35 = vshll.u32 %v1009_v34, %v285_v23  ;;  %v300_v37 = vshll.u32 %v1010_v36, %v285_v23  ;;  %vm303_vm1 = vcmp.lt.s32.totalorder %v284_v22, 1  ;;  %vm305_vm2 = vcmp.lt.s32.totalorder %v284_v22, 3 }
  0xa3   : > { %v289_v38 = vshrl.u32 %v1007_v30, %v286_v25  ;;  %v292_v39 = vshrl.u32 %v1008_v32, %v286_v25  ;;  %v295_v40 = vshrl.u32 %v1009_v34, %v286_v25  ;;  %v287_v41 = vshrl.u32 %v1006_v26, %v286_v25 }
  0xa4   : > { %v298_v42 = vshrl.u32 %v1010_v36, %v286_v25  ;;  %v301_v44 = vshrl.u32 %v1011_v43, %v286_v25  ;;  %vm385_vm3 = vcmp.gt.s32.totalorder %v384_v29, 0  ;;  %vm306_vm4 = vcmp.lt.s32.totalorder %v284_v22, 4 }
  0xa5   : > { %v290_v45 = vor.u32 %v289_v38, %v288_v27  ;;  %v293_v46 = vor.u32 %v292_v39, %v291_v31  ;;  %v296_v47 = vor.u32 %v295_v40, %v294_v33  ;;  %v386_v50 = vsel %vm385_vm3, %v384_v29, 0 }
  0xa6   : > { %v299_v48 = vor.u32 %v298_v42, %v297_v35  ;;  %v302_v49 = vor.u32 %v301_v44, %v300_v37  ;;  %vm304_vm5 = vcmp.lt.s32.totalorder %v284_v22, 2  ;;  %v388_v61 = vand.u32 31, %v386_v50 }
  0xa7   : > { %v307_v51 = vsel %vm303_vm1, %v287_v41, %v290_v45  ;;  %v308_v52 = vsel %vm306_vm4, %v296_v47, 2102212464  ;;  %v311_v53 = vsel %vm303_vm1, %v290_v45, %v293_v46  ;;  %v315_v54 = vsel %vm303_vm1, %v293_v46, %v296_v47 }
  0xa8   : > { %v309_v55 = vsel %vm305_vm2, %v293_v46, %v308_v52  ;;  %v312_v56 = vsel %vm306_vm4, %v299_v48, 920167782  ;;  %v316_v57 = vsel %vm306_vm4, %v302_v49, 1326507024  ;;  %v387_v9 = vshrl.u32 %v386_v50, 5 }
  0xa9   : > { %v313_v59 = vsel %vm305_vm2, %v296_v47, %v312_v56  ;;  %v317_v60 = vsel %vm305_vm2, %v299_v48, %v316_v57  ;;  %v310_v62 = vsel %vm304_vm5, %v307_v51, %v309_v55  ;;  %v389_v10 = vsub.s32 32, %v388_v61 }
  0xaa   : > { %v314_v63 = vsel %vm304_vm5, %v311_v53, %v313_v59  ;;  %v318_v0 = vsel %vm304_vm5, %v315_v54, %v317_v60  ;;  %v326_v13 = vmul.u32 %v1125_v24, %v310_v62  ;;  %v391_v14 = vshll.u32 %v1006_v26, %v388_v61 }
  0xab   : > { %v1138_v1 = vmul.u32.u64.low %v1125_v24, %v318_v0  ;;  %v1139_v4 = vmul.u32.u64.high %v1125_v24, %v318_v0, %v1138_v1  ;;  %v1142_v5 = vmul.u32.u64.low %v1125_v24, %v314_v63  ;;  %v1143_v6 = vmul.u32.u64.high %v1125_v24, %v314_v63, %v1142_v5 }
  0xac   : > { %v394_v15 = vshll.u32 %v1007_v30, %v388_v61  ;;  %v397_v16 = vshll.u32 %v1008_v32, %v388_v61  ;;  %v392_v17 = vshrl.u32 %v1007_v30, %v389_v10  ;;  %v395_v18 = vshrl.u32 %v1008_v32, %v389_v10 }
  0xad   : > { %v398_v20 = vshrl.u32 %v1009_v34, %v389_v10  ;;  %v400_v21 = vshll.u32 %v1009_v34, %v388_v61  ;;  %vm328_vm6 = vc.u32 %v1139_v4, %v1142_v5  ;;  %v329_v22 = vadd.s32 1, %v1143_v6 }
  0xae   : > { %v401_v23 = vshrl.u32 %v1010_v36, %v389_v10  ;;  %v403_v25 = vshll.u32 %v1010_v36, %v388_v61  ;;  %v393_v27 = vor.u32 %v392_v17, %v391_v14  ;;  %v396_v28 = vor.u32 %v395_v18, %v394_v15 }
  0xaf   : > { %v399_v29 = vor.u32 %v398_v20, %v397_v16  ;;  %v404_v31 = vshrl.u32 %v1011_v43, %v389_v10  ;;  %v330_v24 = vsel %vm328_vm6, %v329_v22, %v1143_v6  ;;  %vm406_vm7 = vcmp.lt.s32.totalorder %v387_v9, 1 }
  0xb0   : > { %v402_v33 = vor.u32 %v401_v23, %v400_v21  ;;  %vm409_vm8 = vcmp.lt.s32.totalorder %v387_v9, 4  ;;  %v331_v30 = vadd.s32 %v330_v24, %v326_v13  ;;  %vm408_vm9 = vcmp.lt.s32.totalorder %v387_v9, 3 }
  0xb1   : > { %v405_v32 = vor.u32 %v404_v31, %v403_v25  ;;  %v411_v34 = vsel %vm409_vm8, %v399_v29, 2102212464  ;;  %v390_v35 = vshrl.u32 %v1006_v26, %v389_v10  ;;  %v414_v37 = vsel %vm406_vm7, %v393_v27, %v396_v28 }
  0xb2   : > { %v415_v38 = vsel %vm409_vm8, %v402_v33, 920167782  ;;  %v418_v39 = vsel %vm406_vm7, %v396_v28, %v399_v29  ;;  %v332_v40 = vadd.s32 536870912, %v331_v30  ;;  %vm407_vm10 = vcmp.lt.s32.totalorder %v387_v9, 2 }
  0xb3   : > { %v416_v36 = vsel %vm408_vm9, %v399_v29, %v415_v38  ;;  %v419_v41 = vsel %vm409_vm8, %v405_v32, 1326507024  ;;  %v410_v42 = vsel %vm406_vm7, %v390_v35, %v393_v27  ;;  %v412_v43 = vsel %vm408_vm9, %v396_v28, %v411_v34 }
  0xb4   : > { %v417_v44 = vsel %vm407_vm10, %v414_v37, %v416_v36  ;;  %v420_v45 = vsel %vm408_vm9, %v402_v33, %v419_v41  ;;  %v333_v46 = vshrl.u32 %v332_v40, 30  ;;  %v413_v52 = vsel %vm407_vm10, %v410_v42, %v412_v43 }
  0xb5   : > { %v421_v47 = vsel %vm407_vm10, %v418_v39, %v420_v45  ;;  %v1153_v48 = vmul.u32.u64.low %v422_v11, %v417_v44  ;;  %v1154_v49 = vmul.u32.u64.high %v422_v11, %v417_v44, %v1153_v48  ;;  %v429_v55 = vmul.u32 %v422_v11, %v413_v52 }
  0xb6   : > { %v1156_v50 = vmul.u32.u64.low %v422_v11, %v421_v47  ;;  %v1157_v51 = vmul.u32.u64.high %v422_v11, %v421_v47, %v1156_v50  ;;  %v334_v26 = vshll.u32 %v333_v46, 30  ;;  %v327_v9 = vadd.s32 %v1142_v5, %v1139_v4  ;;  %v688_v47 = vpop.permute.xlu1 %687 }
  0xb7   : > { %v432_v54 = vadd.s32 1, %v1154_v49  ;;  %v357_v33 = vsub.s32 4, %v333_v46  ;;  %vm1172_vm1 = vcmp.le.f32.partialorder %v374_v19, 0.7853982  ;;  %vm699_vm2 = vcmask 252928  }
  0xb8   : > { %v335_v53 = vsub.s32 %v331_v30, %v334_v26  ;;  %vm431_vm11 = vc.u32 %v1157_v51, %v1153_v48  ;;  %v430_v31 = vadd.s32 %v1153_v48, %v1157_v51  ;;  %vm714_vm3 = vcmask 7168  }
  0xb9   : > { %v433_v57 = vsel %vm431_vm11, %v432_v54, %v1154_v49  ;;  %v358_v40 = vsel %vm273_vm14, %v357_v33, %v333_v46  ;;  %v703_v54 = vpop.permute.xlu0 %702  ;;  %vm363_vm10 = vweird.f32 %v1115_v7  ;;  %vm745_vm11 = vcmask 261120  }
  0xba   : > { %v337_v56 = vsub.s32 0, %v335_v53  ;;  %v434_v58 = vadd.s32 %v433_v57, %v429_v55  ;;  %v360_v43 = vsel %vm272_vm15, 0, %v358_v40 }
  0xbb   : > { %v570_v48 = vadd.s32 3, %v360_v43  ;;  %v364_v26 = vand.u32 3, %v360_v43 }
  0xbc   : > { %v847_v59 = vmin.u32 %v337_v56, %v335_v53  ;;  %v435_v60 = vadd.s32 536870912, %v434_v58  ;;  %v1179_v56 = vpop.permute.xlu1 %689 }
  0xbd   : > { %v571_v52 = vand.u32 3, %v570_v48  ;;  %vm369_vm4 = vcmp.eq.s32.totalorder %v364_v26, 2  ;;  %vm366_vm6 = vcmp.eq.s32.totalorder %v364_v26, 0  ;;  %vm365_vm8 = vcmp.lt.s32.totalorder %v364_v26, 2 }
  0xbe   : > { %v339_v61 = vclz %v847_v59  ;;  %v436_v62 = vshrl.u32 %v435_v60, 30 }
  0xbf   : > { %vm576_vm5 = vcmp.eq.s32.totalorder %v571_v52, 2  ;;  %vm573_vm7 = vcmp.eq.s32.totalorder %v571_v52, 0  ;;  %vm572_vm9 = vcmp.lt.s32.totalorder %v571_v52, 2 }
  0xc0   : > { %v848_v63 = vadd.s32 4294967294, %v339_v61  ;;  %v437_v0 = vshll.u32 %v436_v62, 30  ;;  %v460_v49 = vsub.s32 4, %v436_v62 }
  0xc2   : > { %vm849_vm12 = vcmp.lt.s32.totalorder %v848_v63, 0  ;;  %v438_v6 = vsub.s32 %v434_v58, %v437_v0  ;;  %v862_v0 = vld [vmem:[%s1256_s3] ss:$0 sm:$0xff] }
  0xc3   : > { %v342_v1 = vsel %vm849_vm12, 0, %v848_v63 }
  0xc4   : > { %v343_v10 = vsub.s32 32, %v342_v1  ;;  %v347_v11 = vsub.s32 4294967266, %v342_v1  ;;  %v440_v13 = vsub.s32 0, %v438_v6  ;;  %v344_v14 = vshll.u32 %v335_v53, %v342_v1  ;;  %v863_v1 = vld [vmem:[%s1257_s4] ss:$0 sm:$0xff] }
  0xc5   : > { %v461_v53 = vsel %vm376_vm0, %v460_v49, %v436_v62 }
  0xc6   : > { %v345_v15 = vshrl.u32 %v327_v9, %v343_v10  ;;  %v348_v16 = vadd.s32 127, %v347_v11  ;;  %v851_v17 = vmin.u32 %v440_v13, %v438_v6  ;;  %v463_v59 = vsel %vm1172_vm1, 0, %v461_v53  ;;  %v709_v11 = vpop.permute.xlu0 %708 }
  0xc7   : > { %v674_v10 = vadd.s32 3, %v463_v59 }
  0xc8   : > { %v346_v18 = vor.u32 %v345_v15, %v344_v14  ;;  %v349_v20 = vshll.u32 %v348_v16, 23  ;;  %v442_v21 = vclz %v851_v17  ;;  %v696_v15 = vpop.permute.xlu1 %695 }
  0xca   : > { %v350_v22 = vor.u32 4788187, %v349_v20  ;;  %v852_v23 = vadd.s32 4294967294, %v442_v21  ;;  %v353_v27 = vcvt.s32.f32 %v346_v18  ;;  %v700_v18 = vsel %vm699_vm2, %v688_v47, %v694_v8 }
  0xcb   : > { %v715_v20 = vsel %vm714_vm3, %v703_v54, %v709_v11 }
  0xcc   : > { %v351_v25 = vand.u32 2147483647, %v350_v22  ;;  %vm853_vm13 = vcmp.lt.s32.totalorder %v852_v23, 0 }
  0xcd   : > { %v445_v29 = vsel %vm853_vm13, 0, %v852_v23  ;;  %v467_v23 = vand.u32 3, %v463_v59 }
  0xce   : > { %v354_v28 = vmul.f32 %v353_v27, %v351_v25  ;;  %v446_v4 = vsub.s32 32, %v445_v29  ;;  %v450_v5 = vsub.s32 4294967266, %v445_v29  ;;  %v447_v30 = vshll.u32 %v438_v6, %v445_v29 }
  0xcf   : > { %vm472_vm12 = vcmp.eq.s32.totalorder %v467_v23, 2 }
  0xd0   : > { %v355_v24 = vxor.u32 2147483648, %v354_v28  ;;  %v448_v32 = vshrl.u32 %v430_v31, %v446_v4  ;;  %v451_v34 = vadd.s32 127, %v450_v5  ;;  %v705_v4 = vpop.permute.xlu1 %704 }
  0xd2   : > { %v356_v35 = vsel %vm273_vm14, %v355_v24, %v354_v28  ;;  %v449_v38 = vor.u32 %v448_v32, %v447_v30  ;;  %v452_v39 = vshll.u32 %v451_v34, 23  ;;  %vm469_vm14 = vcmp.eq.s32.totalorder %v467_v23, 0 }
  0xd3   : > { %v359_v37 = vsel %vm272_vm15, %v1115_v7, %v356_v35  ;;  %v675_v7 = vand.u32 3, %v674_v10 }
  0xd4   : > { %931 = vcosq.f32 %v359_v37  ;;  %v453_v36 = vor.u32 4788187, %v452_v39  ;;  %v456_v42 = vcvt.s32.f32 %v449_v38 }
  0xd5   : > { %933 = vsinq.f32 %v359_v37  ;;  %vm680_vm13 = vcmp.eq.s32.totalorder %v675_v7, 2  ;;  %vm677_vm15 = vcmp.eq.s32.totalorder %v675_v7, 0 }
  0xd6   : > { %v454_v41 = vand.u32 2147483647, %v453_v36  ;;  %v711_v36 = vpop.permute.xlu1 %710 }
  0xd8   : > { %v457_v44 = vmul.f32 %v456_v42, %v454_v41  ;;  %v701_v41 = vsel %vm699_vm2, %v1179_v56, %v696_v15 }
  0xda   : > { %v458_v45 = vxor.u32 2147483648, %v457_v44 }
  0xdc   : > { %v459_v46 = vsel %vm376_vm0, %v458_v45, %v457_v44  ;;  %vm468_vm0 = vcmp.lt.s32.totalorder %v467_v23, 2  ;;  %v716_v44 = vsel %vm714_vm3, %v705_v4, %v711_v36 }
  0xdd   : > { %v462_v51 = vsel %vm1172_vm1, %v1119_v12, %v459_v46  ;;  %vm676_vm1 = vcmp.lt.s32.totalorder %v675_v7, 2 }
  0xde   : > { %935 = vcosq.f32 %v462_v51 }
  0xdf   : > { %937 = vsinq.f32 %v462_v51 }
  0xe1   : > { %v932_v55 = vpop.eup %931 }
  0xe2   : > { %v934_v57 = vpop.eup %933  ;;  %v370_v58 = vxor.u32 2147483648, %v932_v55 }
  0xe3   : > { %v367_v19 = vxor.u32 2147483648, %v934_v57 }
  0xe4   : > { %v371_v60 = vsel %vm369_vm4, %v370_v58, %v934_v57  ;;  %v578_v61 = vsel %vm576_vm5, %v370_v58, %v934_v57  ;;  %vm466_vm4 = vweird.f32 %v1119_v12 }
  0xe5   : > { %v368_v62 = vsel %vm366_vm6, %v932_v55, %v367_v19  ;;  %v575_v63 = vsel %vm573_vm7, %v932_v55, %v367_v19 }
  0xe6   : > { %v372_v6 = vsel %vm365_vm8, %v368_v62, %v371_v60  ;;  %v579_v9 = vsel %vm572_vm9, %v575_v63, %v578_v61 }
  0xe7   : > { %v373_v13 = vsel %vm363_vm10, nan, %v372_v6  ;;  %v580_v14 = vsel %vm363_vm10, nan, %v579_v9 }
  0xe8   : > { %v726_v16 = vmul.f32 %v862_v0, %v580_v14  ;;  %v739_v17 = vmul.f32 %v863_v1, %v580_v14  ;;  %v717_v21 = vmul.f32 %v373_v13, %v1100_v2 }
  0xea   : > { %v728_v22 = vmul.f32 %v726_v16, %v700_v18  ;;  %v741_v28 = vmul.f32 %v739_v17, %v715_v20 }
  0xeb   : > { %v936_v25 = vpop.eup %935 }
  0xec   : > { %v730_v27 = vadd.f32 %v728_v22, %v717_v21  ;;  %v938_v29 = vpop.eup %937  ;;  %v473_v31 = vxor.u32 2147483648, %v936_v25 }
  0xed   : > { %v470_v5 = vxor.u32 2147483648, %v938_v29 }
  0xee   : > { %v743_v24 = vadd.f32 %v741_v28, %v730_v27  ;;  %v474_v33 = vsel %vm472_vm12, %v473_v31, %v938_v29  ;;  %v682_v2 = vsel %vm680_vm13, %v473_v31, %v938_v29 }
  0xef   : > { %v471_v30 = vsel %vm469_vm14, %v936_v25, %v470_v5  ;;  %v679_v32 = vsel %vm677_vm15, %v936_v25, %v470_v5 }
  0xf0   : > { %746 = vst.msk [vmem:[%s234_s9] sm:$0xff] %vm745_vm11, %v743_v24  ;;  %v475_v34 = vsel %vm468_vm0, %v471_v30, %v474_v33  ;;  %v683_v35 = vsel %vm676_vm1, %v679_v32, %v682_v2 }
  0xf1   : > { %v476_v37 = vsel %vm466_vm4, nan, %v475_v34  ;;  %v684_v38 = vsel %vm466_vm4, nan, %v683_v35 }
  0xf2   : > { %v727_v39 = vmul.f32 %v862_v0, %v684_v38  ;;  %v740_v40 = vmul.f32 %v863_v1, %v684_v38  ;;  %v718_v42 = vmul.f32 %v476_v37, %v1103_v3 }
  0xf4   : > { %v729_v43 = vmul.f32 %v727_v39, %v701_v41  ;;  %v742_v45 = vmul.f32 %v740_v40, %v716_v44 }
  0xf6   : > { %v731_v12 = vadd.f32 %v729_v43, %v718_v42 }
  0xf8   : > { %v744_v47 = vadd.f32 %v742_v45, %v731_v12 }
  0xfa   : > { %747 = vst.msk [vmem:[%s234_s9 + $0x8] sm:$0xff] %vm745_vm11, %v744_v47 }
  0xfb   : > { %952 = shalt.err (!%p949_p3)
}
  0xfc   : > { %s953_s25 = scalar_lea.hbm %s1206_s14, 256  ;;  %s957_s6 = scalar_lea.hbm %s1258_s5, 512 }
  0xfd   : > { %p954_p4 = scmp.ne.s32.totalorder %s1206_s14, %s953_s25  ;;  %p958_p9 = scmp.lt.s32.totalorder %s1206_s14, %s1258_s5 }
  0xfe   : > { %p959_p10 = scmp.lt.s32.totalorder %s957_s6, %s953_s25 }
  0xff   : > { %p955_p7 = pnand %p954_p4, %p1083_p5 }
 0x100   : > { %p960_p11 = por %p959_p10, %p958_p9 }
 0x101   : > { %p956_p8 = pneg %p955_p7 }
 0x103   : > { %p961_p12 = pnand %p960_p11, %p956_p8 }
 0x105   : > { %964 = shalt.err (!%p961_p12)
}
 0x106   : > { %s1013_s9 = smov 128   ;;  %s1014_s10 = smov 8  }
 0x107   : > { %878 = dma.vmem_to_hbm [thread:$0]  (%p1083_p5), %s1208_s11, 256, %s1206_s14, %s1213_s22, %s1013_s9, %s1013_s9, %s1014_s10  }
 0x108 PF: > { %p884_p13 = scmp.ge.s32.totalorder %s999_s21, 2  ;;  %s777_s12 = sand.u32 1, %s987_s18  }
 0x109   : > { %s778_s13 = scalar_lea.sflag [#allocation3], %s777_s12 }
 0x10a   : > { %p881_p0 = pnand %p884_p13, %p1087_p6 }
 0x10c   : > { %p882_p1 = pneg %p881_p0 }
 0x10e   : > { %982 = dma.done.wait (%p882_p1), %s778_s13, 256  }
 0x10f   : > { %984 = vsyncadd (%p882_p1), %s778_s13, 4294967040  ;;  %p15_p2 = scmp.ge.s32.totalorder %s1070_s24, 4   ;;  %s1263_s18 = smov %s991_s19 }
 0x110   : > { %s1264_s19 = smov %s995_s20  ;;  %s1265_s20 = smov %s1081_s27 }
 0x111   : > { %s1266_s21 = smov %s1070_s24  ;;  %17 = sbr.rel (!%p15_p2) target bundleno = 3 (0x3), region = 78 }
 0x116   :  { %783 = vsyncpa [#allocation3], 1 }
 0x117   :  { %785 = vsyncpa [#allocation3 + $0x1], 1 }

</bundles_post_ra>
